<compile_context>
chip_gen: v7x
topology: tpu7x:2x2x1
jax: 0.10.0
libtpu: 0.0.40
codegen_flags: <defaults>
</compile_context>

<pallas_src>
import functools

import jax
import jax.numpy as jnp
from jax.experimental import pallas as pl
from jax.experimental.pallas import tpu as pltpu

_SUBLANE = 8
_LANE = 128


# ----------------------------------------------------------------------------
# kernels
# ----------------------------------------------------------------------------
def _ln_channels_last_kernel(x_ref, w_ref, b_ref, o_ref, *, eps):
    # x_ref: (TR, C) row tile; w_ref / b_ref: (1, C) resident f32 params.
    x = x_ref[...].astype(jnp.float32)
    # one-pass statistics
    mu = jnp.mean(x, axis=-1, keepdims=True)
    ms = jnp.mean(x * x, axis=-1, keepdims=True)
    inv = jax.lax.rsqrt(ms - mu * mu + eps)
    y = (x - mu) * inv
    o_ref[...] = (y * w_ref[...] + b_ref[...]).astype(o_ref.dtype)


def _ln_channels_first_kernel(x_ref, w_ref, b_ref, o_ref, *, eps):
    # x_ref: (1, C, TL) block; normalize over C (sublane axis).
    # w_ref / b_ref: (C, 1) resident f32 params (broadcast across lanes).
    x = x_ref[0].astype(jnp.float32)                 # (C, TL)
    mu = jnp.mean(x, axis=0, keepdims=True)          # (1, TL)
    ms = jnp.mean(x * x, axis=0, keepdims=True)
    inv = jax.lax.rsqrt(ms - mu * mu + eps)
    y = (x - mu) * inv
    o_ref[0] = (y * w_ref[...] + b_ref[...]).astype(o_ref.dtype)


# ----------------------------------------------------------------------------
# tile-size pickers (budget ~2 MiB per f32 buffer; caps keep grids sane and
# the double-buffered working set well under the v5e 16 MiB scoped default)
# ----------------------------------------------------------------------------
def _round_down(v, m):
    return (v // m) * m


def _pick_row_tile(R, C, itemsize=4, budget=1 << 21, cap=2048):
    if R <= _SUBLANE:
        return R
    tr = max(_SUBLANE, min(cap, budget // (itemsize * max(C, 1))))
    tr = _round_down(tr, _SUBLANE)
    return R if tr >= R else tr


def _pick_lane_tile(L, C, itemsize=4, budget=1 << 21, cap=8192):
    if L <= _LANE:
        return L
    tl = max(_LANE, min(cap, budget // (itemsize * max(C, 1))))
    tl = _round_down(tl, _LANE)
    return L if tl >= L else tl


def _sanitize_tile(t, full, unit):
    """Clamp a (possibly user-supplied) tile to the (8,128) tiling rules."""
    t = min(t, full)
    if t >= full:
        return full
    return max(unit, _round_down(t, unit))


# ----------------------------------------------------------------------------
# pallas_call wrappers
# ----------------------------------------------------------------------------
def _layernorm_rows(x2d, w, b, *, eps, block_rows=None):
    # x2d: (R, C), normalize over C.
    R, C = x2d.shape
    tr = block_rows if block_rows is not None else _pick_row_tile(R, C)
    tr = _sanitize_tile(tr, R, _SUBLANE)
    w2 = w.astype(jnp.float32).reshape(1, C)
    b2 = b.astype(jnp.float32).reshape(1, C)
    kern = functools.partial(_ln_channels_last_kernel, eps=eps)
    return pl.pallas_call(
        kern,
        out_shape=jax.ShapeDtypeStruct((R, C), x2d.dtype),
        grid=(pl.cdiv(R, tr),),
        in_specs=[
            pl.BlockSpec((tr, C), lambda r: (r, 0)),
            pl.BlockSpec((1, C), lambda r: (0, 0)),   # resident params
            pl.BlockSpec((1, C), lambda r: (0, 0)),
        ],
        out_specs=pl.BlockSpec((tr, C), lambda r: (r, 0)),
        compiler_params=pltpu.CompilerParams(
            dimension_semantics=("parallel",)),
    )(x2d, w2, b2)


def _layernorm_chfirst(x3d, w, b, *, eps, block_lanes=None):
    # x3d: (N, C, L), normalize over C (axis 1).  Lane-dense output (L on lanes).
    N, C, L = x3d.shape
    tl = block_lanes if block_lanes is not None else _pick_lane_tile(L, C)
    tl = _sanitize_tile(tl, L, _LANE)
    w2 = w.astype(jnp.float32).reshape(C, 1)
    b2 = b.astype(jnp.float32).reshape(C, 1)
    kern = functools.partial(_ln_channels_first_kernel, eps=eps)
    return pl.pallas_call(
        kern,
        out_shape=jax.ShapeDtypeStruct((N, C, L), x3d.dtype),
        grid=(N, pl.cdiv(L, tl)),
        in_specs=[
            pl.BlockSpec((1, C, tl), lambda n, l: (n, 0, l)),
            pl.BlockSpec((C, 1), lambda n, l: (0, 0)),   # resident params
            pl.BlockSpec((C, 1), lambda n, l: (0, 0)),
        ],
        out_specs=pl.BlockSpec((1, C, tl), lambda n, l: (n, 0, l)),
        compiler_params=pltpu.CompilerParams(
            dimension_semantics=("parallel", "parallel")),
    )(x3d, w2, b2)


# ----------------------------------------------------------------------------
# public module-equivalent forward
# ----------------------------------------------------------------------------
def layer_norm(x, weight, bias, eps=1e-6, data_format="channels_last",
               block_rows=None, block_lanes=None):
    """Forward pass of ConvNeXt-style LayerNorm (both data formats)."""
    if data_format not in ("channels_last", "channels_first"):
        raise NotImplementedError(data_format)

    if data_format == "channels_last":
        C = x.shape[-1]
        lead = x.shape[:-1]
        R = 1
        for d in lead:
            R *= d
        y = _layernorm_rows(x.reshape(R, C), weight, bias,
                            eps=eps, block_rows=block_rows)
        return y.reshape(*lead, C)

    # channels_first: (N, C, *spatial) -> (N, C, prod(spatial)); no transpose.
    N, C = x.shape[0], x.shape[1]
    spatial = x.shape[2:]
    L = 1
    for d in spatial:
        L *= d
    y = _layernorm_chfirst(x.reshape(N, C, L), weight, bias,
                           eps=eps, block_lanes=block_lanes)
    return y.reshape(N, C, *spatial)


# ----------------------------------------------------------------------------
# pure-JAX reference (mirrors the PyTorch module)
# ----------------------------------------------------------------------------
def layer_norm_ref(x, weight, bias, eps=1e-6, data_format="channels_last"):
    x32 = x.astype(jnp.float32)
    if data_format == "channels_last":
        mu = jnp.mean(x32, axis=-1, keepdims=True)
        var = jnp.mean((x32 - mu) ** 2, axis=-1, keepdims=True)
        y = (x32 - mu) / jnp.sqrt(var + eps) * weight + bias
        return y.astype(x.dtype)
    mu = jnp.mean(x32, axis=1, keepdims=True)
    var = jnp.mean((x32 - mu) ** 2, axis=1, keepdims=True)
    xn = (x32 - mu) / jnp.sqrt(var + eps)
    shape = (1, -1) + (1,) * (x.ndim - 2)
    return (weight.reshape(shape) * xn + bias.reshape(shape)).astype(x.dtype)


# ----------------------------------------------------------------------------
# self-test
# ----------------------------------------------------------------------------
if __name__ == "__main__":
    key = jax.random.PRNGKey(0)
    k1, k2, k3, k4, k5 = jax.random.split(key, 5)

    # --- channels_first: (N, C, H, W) = (2, 4, 16, 16) -----------------------
    C = 4
    x_cf = jax.random.normal(k1, (2, C, 16, 16), dtype=jnp.float32)
    w_cf = (1.0 + 0.1 * jax.random.normal(k2, (C,))).astype(jnp.float32)
    b_cf = (0.1 * jax.random.normal(k3, (C,))).astype(jnp.float32)

    f_cf = jax.jit(functools.partial(layer_norm, eps=1e-6,
                                     data_format="channels_first",
                                     block_lanes=128))  # 2 lane-tiles -> pipelined grid
    y_cf = f_cf(x_cf, w_cf, b_cf)
    jax.block_until_ready(y_cf)
    r_cf = layer_norm_ref(x_cf, w_cf, b_cf, 1e-6, "channels_first")
    assert y_cf.shape == x_cf.shape
    assert float(jnp.max(jnp.abs(y_cf - r_cf))) < 1e-4

    # --- channels_last: (N, H, W, C) = (2, 8, 8, 32) --------------------------
    C2 = 32
    x_cl = jax.random.normal(k4, (2, 8, 8, C2), dtype=jnp.float32)
    w_cl = (1.0 + 0.05 * jax.random.normal(k5, (C2,))).astype(jnp.float32)
    b_cl = jnp.zeros((C2,), jnp.float32)

    f_cl = jax.jit(functools.partial(layer_norm, eps=1e-6,
                                     data_format="channels_last",
                                     block_rows=64))    # 2 row-tiles -> pipelined grid
    y_cl = f_cl(x_cl, w_cl, b_cl)
    jax.block_until_ready(y_cl)
    r_cl = layer_norm_ref(x_cl, w_cl, b_cl, 1e-6, "channels_last")
    assert y_cl.shape == x_cl.shape
    assert float(jnp.max(jnp.abs(y_cl - r_cl))) < 1e-4

    # --- channels_last, ragged row count (exercises partial last tile) --------
    x_rg = jax.random.normal(k1, (3, 5, C2), dtype=jnp.float32)  # R = 15 rows
    f_rg = jax.jit(functools.partial(layer_norm, eps=1e-6,
                                     data_format="channels_last",
                                     block_rows=8))
    y_rg = f_rg(x_rg, w_cl, b_cl)
    jax.block_until_ready(y_rg)
    r_rg = layer_norm_ref(x_rg, w_cl, b_cl, 1e-6, "channels_last")
    assert y_rg.shape == x_rg.shape
    assert float(jnp.max(jnp.abs(y_rg - r_rg))) < 1e-4

    # --- channels_last, bf16 I/O (f32 compute inside the kernel) -------------
    x_bf = x_cl.astype(jnp.bfloat16)
    f_bf = jax.jit(functools.partial(layer_norm, eps=1e-6,
                                     data_format="channels_last"))
    y_bf = f_bf(x_bf, w_cl, b_cl)
    jax.block_until_ready(y_bf)
    r_bf = layer_norm_ref(x_bf, w_cl, b_cl, 1e-6, "channels_last")
    assert y_bf.dtype == jnp.bfloat16 and y_bf.shape == x_bf.shape
    assert float(jnp.max(jnp.abs(y_bf.astype(jnp.float32)
                                 - r_bf.astype(jnp.float32)))) < 5e-2

    print("KERNEL_OK")
</pallas_src>

<mosaic_0001>
module attributes {stable_mosaic.version = 11 : i64} {
  func.func @_ln_channels_first_kernel(%arg0: i32, %arg1: i32, %arg2: memref<1x4x128xf32, #tpu.memory_space<vmem>>, %arg3: memref<4x1xf32, #tpu.memory_space<vmem>>, %arg4: memref<4x1xf32, #tpu.memory_space<vmem>>, %arg5: memref<1x4x128xf32, #tpu.memory_space<vmem>>) attributes {dimension_semantics = [#tpu.dimension_semantics<parallel>, #tpu.dimension_semantics<parallel>], iteration_bounds = array<i64: 2, 2>, scalar_prefetch = 0 : i64, scratch_operands = 0 : i64, tpu.core_type = #tpu.core_type<tc>, window_params = [{transform_indices = @transform_0, window_bounds = array<i64: 1, 4, 128>}, {pipeline_mode = #tpu.pipeline_mode<synchronous>, transform_indices = @transform_1, window_bounds = array<i64: 4, 1>}, {pipeline_mode = #tpu.pipeline_mode<synchronous>, transform_indices = @transform_2, window_bounds = array<i64: 4, 1>}, {transform_indices = @transform_3, window_bounds = array<i64: 1, 4, 128>}]} {
    %c0 = arith.constant 0 : index
    %c0_0 = arith.constant 0 : index
    %c0_1 = arith.constant 0 : index
    %0 = vector.load %arg2[%c0, %c0_0, %c0_1] : memref<1x4x128xf32, #tpu.memory_space<vmem>>, vector<1x4x128xf32>
    %1 = vector.shape_cast %0 : vector<1x4x128xf32> to vector<4x128xf32>
    %cst = arith.constant dense<0.000000e+00> : vector<128xf32>
    %2 = vector.multi_reduction <add>, %1, %cst [0] : vector<4x128xf32> to vector<128xf32>
    %3 = vector.shape_cast %2 : vector<128xf32> to vector<1x128xf32>
    %cst_2 = arith.constant 4.000000e+00 : f32
    %4 = vector.broadcast %cst_2 : f32 to vector<1x128xf32>
    %5 = arith.divf %3, %4 : vector<1x128xf32>
    %6 = arith.mulf %1, %1 : vector<4x128xf32>
    %cst_3 = arith.constant dense<0.000000e+00> : vector<128xf32>
    %7 = vector.multi_reduction <add>, %6, %cst_3 [0] : vector<4x128xf32> to vector<128xf32>
    %8 = vector.shape_cast %7 : vector<128xf32> to vector<1x128xf32>
    %cst_4 = arith.constant 4.000000e+00 : f32
    %9 = vector.broadcast %cst_4 : f32 to vector<1x128xf32>
    %10 = arith.divf %8, %9 : vector<1x128xf32>
    %11 = arith.mulf %5, %5 : vector<1x128xf32>
    %12 = arith.subf %10, %11 : vector<1x128xf32>
    %cst_5 = arith.constant 9.99999997E-7 : f32
    %13 = vector.broadcast %cst_5 : f32 to vector<1x128xf32>
    %14 = arith.addf %12, %13 : vector<1x128xf32>
    %15 = math.rsqrt %14 : vector<1x128xf32>
    %16 = vector.broadcast %5 : vector<1x128xf32> to vector<4x128xf32>
    %17 = arith.subf %1, %16 : vector<4x128xf32>
    %18 = vector.broadcast %15 : vector<1x128xf32> to vector<4x128xf32>
    %19 = arith.mulf %17, %18 : vector<4x128xf32>
    %c0_6 = arith.constant 0 : index
    %c0_7 = arith.constant 0 : index
    %20 = vector.load %arg3[%c0_6, %c0_7] : memref<4x1xf32, #tpu.memory_space<vmem>>, vector<4x1xf32>
    %21 = vector.broadcast %20 : vector<4x1xf32> to vector<4x128xf32>
    %22 = arith.mulf %19, %21 : vector<4x128xf32>
    %c0_8 = arith.constant 0 : index
    %c0_9 = arith.constant 0 : index
    %23 = vector.load %arg4[%c0_8, %c0_9] : memref<4x1xf32, #tpu.memory_space<vmem>>, vector<4x1xf32>
    %24 = vector.broadcast %23 : vector<4x1xf32> to vector<4x128xf32>
    %25 = arith.addf %22, %24 : vector<4x128xf32>
    %c0_10 = arith.constant 0 : index
    %c0_11 = arith.constant 0 : index
    %c0_12 = arith.constant 0 : index
    %26 = vector.load %arg5[%c0_10, %c0_11, %c0_12] : memref<1x4x128xf32, #tpu.memory_space<vmem>>, vector<1x4x128xf32>
    %27 = vector.shape_cast %26 : vector<1x4x128xf32> to vector<4x128xf32>
    %28 = vector.shape_cast %25 : vector<4x128xf32> to vector<1x4x128xf32>
    tpu.vector_store %arg5[%c0_10, %c0_11, %c0_12], %28 {strides = array<i32>} : memref<1x4x128xf32, #tpu.memory_space<vmem>>, vector<1x4x128xf32>,
    return
  }
  func.func @transform_0(%arg0: i32, %arg1: i32) -> (i32, i32, i32) {
    %c0_i32 = arith.constant 0 : i32
    %c0_i32_0 = arith.constant 0 : i32
    return %arg0, %c0_i32, %arg1 : i32, i32, i32
  }
  func.func @transform_1(%arg0: i32, %arg1: i32) -> (i32, i32) {
    %c0_i32 = arith.constant 0 : i32
    %c0_i32_0 = arith.constant 0 : i32
    %c0_i32_1 = arith.constant 0 : i32
    return %c0_i32, %c0_i32_0 : i32, i32
  }
  func.func @transform_2(%arg0: i32, %arg1: i32) -> (i32, i32) {
    %c0_i32 = arith.constant 0 : i32
    %c0_i32_0 = arith.constant 0 : i32
    %c0_i32_1 = arith.constant 0 : i32
    return %c0_i32, %c0_i32_0 : i32, i32
  }
  func.func @transform_3(%arg0: i32, %arg1: i32) -> (i32, i32, i32) {
    %c0_i32 = arith.constant 0 : i32
    %c0_i32_0 = arith.constant 0 : i32
    return %arg0, %c0_i32, %arg1 : i32, i32, i32
  }
}

</mosaic_0001>

<bundles_post_ra>
// kernel: layer_norm.1
= control target key start
LH: loop header
LB: loop body
LE: loop exit
PB: predicated region body
PF: predicated region fallthrough
CT: control target
= control target key end

     0   :  { %s445_s12 = smov 0   ;;  %s447_s13 = smov 0   ;;  %s509_s0 = inlined_call_operand.vmem [shape: f32[2,4,256], index: 0, kind: input, shape index: {}]   ;;  %s510_s1 = inlined_call_operand.vmem [shape: f32[4,1], index: 1, kind: input, shape index: {}]   ;;  %s511_s2 = inlined_call_operand.vmem [shape: f32[4,1], index: 2, kind: input, shape index: {}]   ;;  %s512_s3 = inlined_call_operand.vmem [shape: f32[2,4,256], index: 3, kind: output, shape index: {}]  }
   0x1   :  { %s449_s14 = smov 0   ;;  %s451_s15 = smov 0  }
   0x2   :  { %s453_s16 = smov 0  }
   0x3 LB: > { %s22_s17 = sadd.s32 1, %s414_s14  ;;  %s25_s18 = sadd.s32 1, %s418_s15  ;;  %s422_s16 = sphi %s453_s16, %s13_s16   ;;  %s418_s15 = sphi %s451_s15, %s516_s15   ;;  %s414_s14 = sphi %s449_s14, %s515_s14   ;;  %s410_s13 = sphi %s447_s13, %s514_s13   ;;  %s406_s12 = sphi %s445_s12, %s513_s12  }
   0x4   : > { %p23_p0 = scmp.ge.s32.totalorder %s22_s17, 2  ;;  %p333_p1 = scmp.ge.s32.totalorder %s422_s16, 1 }
   0x5   : > { %p156_p2 = scmp.lt.s32.totalorder %s422_s16, 5 }
   0x6   : > { %s518_s17 = smov (%p23_p0, %s22_s17), 0  ;;  %s520_s18 = smov (!%p23_p0, %s25_s18), %s418_s15 }
   0x7   : > { %p157_p3 = pnand %p333_p1, %p156_p2  ;;  %p27_p4 = scmp.ge.s32.totalorder %s520_s18, 2 }
   0x8   : > { %v228_v0 = vld [vmem:[%s510_s1] sm:$0xf] (!%p157_p3)  ;;  %v424_v1 = vmov (!%p157_p3), 0   ;;  %p186_p5 = scmp.lt.s32.totalorder (!%p157_p3), %s410_s13, 1  ;;  %p188_p6 = scmp.lt.s32.totalorder (!%p157_p3), %s406_s12, 1  ;;  %vm203_vm0 = vcmask (!%p157_p3), 1043456  }
   0x9   : > { %s522_s18 = smov (%p27_p4, %s520_s18), 0  ;;  %160 = sbr.rel (%p157_p3) target bundleno = 146 (0x92), region = 32 }
   0xa   : > { %381 = vset.pattern.permute.xlu0 (!%p157_p3), %v424_v1  ;;  %v235_v2 = vld [vmem:[%s511_s2] sm:$0xf] (!%p157_p3) }
   0xb   : > { %231 = vperm.xlu0 (!%p157_p3), %381, %v228_v0  }
   0xf   : > { %238 = vperm.xlu0 (!%p157_p3), %381, %v235_v2  }
  0x10   : > { %s524_s13 = smov (!%p186_p5, %s410_s13), 1  ;;  %s526_s12 = smov (!%p188_p6, %s406_s12), 1 }
  0x11   : > { %s334_s23 = sshll.u32 %s524_s13, 1 }
  0x12   : > { %s481_s24 = sadd.s32 %s334_s23, %s526_s12 }
  0x13   : > { %s335_s25 = sshll.u32 %s481_s24, 2 }
  0x14   : > { %s193_s28 = scalar_lea.vmem %s509_s0, %s335_s25  ;;  %s201_s4 = scalar_lea.vmem %s512_s3, %s335_s25 }
  0x15   : > { %v202_v3 = vld [vmem:[%s193_s28] sm:$0xf] }
  0x16   : > { %v204_v4 = vsel %vm203_vm0, %v202_v3, 0.0  ;;  %v213_v5 = vmul.f32 %v202_v3, %v202_v3 }
  0x17   : > { %v205_v6 = vrot.slane %v204_v4, 4 }
  0x18   : > { %v214_v7 = vsel %vm203_vm0, %v213_v5, 0.0 }
  0x19   : > { %v206_v8 = vadd.f32 %v205_v6, %v204_v4  ;;  %v215_v9 = vrot.slane %v214_v7, 4 }
  0x1b   : > { %v207_v10 = vrot.slane %v206_v8, 2  ;;  %v216_v11 = vadd.f32 %v215_v9, %v214_v7 }
  0x1d   : > { %v208_v12 = vadd.f32 %v207_v10, %v206_v8  ;;  %v217_v13 = vrot.slane %v216_v11, 2 }
  0x1f   : > { %v209_v14 = vrot.slane %v208_v12, 1  ;;  %v218_v15 = vadd.f32 %v217_v13, %v216_v11 }
  0x21   : > { %v210_v16 = vadd.f32 %v209_v14, %v208_v12  ;;  %v219_v17 = vrot.slane %v218_v15, 1 }
  0x23   : > { %v212_v18 = vmul.f32 0.25, %v210_v16  ;;  %v220_v19 = vadd.f32 %v219_v17, %v218_v15 }
  0x25   : > { %v221_v20 = vmul.f32 0.25, %v220_v19  ;;  %v222_v21 = vmul.f32 %v212_v18, %v212_v18  ;;  %v226_v24 = vsub.f32 %v202_v3, %v212_v18 }
  0x27   : > { %v223_v22 = vsub.f32 %v221_v20, %v222_v21 }
  0x29   : > { %v224_v23 = vadd.f32 1e-06, %v223_v22 }
  0x2b   : > { %382 = vrsqrt.f32 %v224_v23 }
  0x35   : > { %v383_v25 = vpop.eup %382 }
  0x36   : > { %v227_v26 = vmul.f32 %v383_v25, %v226_v24 }
  0x8a   : > { %v232_v27 = vpop.permute.xlu0 %231 }
  0x8b   : > { %v234_v28 = vmul.f32 %v232_v27, %v227_v26 }
  0x8e   : > { %v239_v29 = vpop.permute.xlu0 %238 }
  0x8f   : > { %v241_v30 = vadd.f32 %v239_v29, %v234_v28 }
  0x91   : > { %242 = vst [vmem:[%s201_s4] sm:$0xf] %v241_v30 }
  0x92 PF: > { %s13_s16 = sadd.s32 1, %s422_s16   ;;  %s513_s12 = smov %s414_s14 }
  0x93   : > { %p10_p7 = scmp.ge.s32.totalorder %s13_s16, 6   ;;  %s514_s13 = smov %s418_s15 }
  0x94   : > { %s515_s14 = smov %s518_s17  ;;  %s516_s15 = smov %s522_s18 }
  0x95   :  { %12 = sbr.rel (!%p10_p7) target bundleno = 3 (0x3), region = 62 }

</bundles_post_ra>
